<compile_context>
chip_gen: v5e
topology: v5e:2x2
jax: 0.10.0
libtpu: 0.0.40
codegen_flags: <defaults>
</compile_context>

<pallas_src>
import numpy as np
import jax
import jax.numpy as jnp
from jax.experimental import pallas as pl
from jax.experimental.pallas import tpu as pltpu

PAD_TOKEN_ID = 0
VOCAB = 64        # V
EMB_DIM = 32      # D
HIDDEN = 32       # H
PACK = 4          # tokens packed per kernel row (PACK * HIDDEN == 128 lanes)
KDIM = PACK * VOCAB          # 256  (block-diagonal contraction dim)
NDIM = PACK * HIDDEN         # 128  (lane-dense output width)

_TM4_BUCKETS = (8, 64, 256, 1024, 2048)   # packed rows per grid step


def _round_up(x, m):
    return ((x + m - 1) // m) * m


def _choose_tm4(t4):
    """Fixed tile-size buckets; prefer >= 2 grid steps (megacore / v7x dual-TC)."""
    for b in reversed(_TM4_BUCKETS):
        if t4 >= 2 * b:
            return b
    return _TM4_BUCKETS[0]


def _encoder_lut_kernel(tok_ref, lut_hi_ref, lut_lo_ref, out_ref):
    """tok_ref: [TM4, PACK] int32; lut_hi/lo_ref: [KDIM, NDIM] bf16 (block-diagonal);
    out_ref: [TM4, NDIM] f32 (lane-dense, full 128 lanes -> unmasked vst)."""
    tm4 = tok_ref.shape[0]
    tok = jnp.clip(tok_ref[...], 0, VOCAB - 1)                      # [TM4, PACK] int32
    col = jax.lax.broadcasted_iota(jnp.int32, (tm4, KDIM), 1)       # [TM4, 256]

    # Select-chain with compile-time-constant lane masks: sel[r, c] = tok[r, c // VOCAB].
    sel = tok[:, PACK - 1:PACK]                                      # [TM4, 1]
    for j in range(PACK - 2, -1, -1):
        sel = jnp.where(col < (j + 1) * VOCAB, tok[:, j:j + 1], sel)

    # Single compare + single cast: exact 0/1 one-hot in bf16 (MXU-native operand).
    onehot = ((col & (VOCAB - 1)) == sel).astype(jnp.bfloat16)       # [TM4, 256] bf16

    # Two native bf16 MXU passes with f32 accumulation; each output element picks
    # exactly one LUT row per block, so hi + lo reproduces the f32 LUT (~4e-6 rel).
    acc = jnp.dot(onehot, lut_hi_ref[...], preferred_element_type=jnp.float32)
    acc = acc + jnp.dot(onehot, lut_lo_ref[...], preferred_element_type=jnp.float32)
    out_ref[...] = acc


def _pallas_encoder(tok4, lut_hi, lut_lo, tm4):
    """tok4: [R, PACK] int32 (R multiple of tm4) -> [R, NDIM] float32."""
    R = tok4.shape[0]
    grid = (R // tm4,)
    flops = 2 * 2 * R * KDIM * NDIM                                  # two bf16 matmuls
    bytes_accessed = (tok4.size * 4 + (lut_hi.size + lut_lo.size) * 2 + R * NDIM * 4)
    return pl.pallas_call(
        _encoder_lut_kernel,
        out_shape=jax.ShapeDtypeStruct((R, NDIM), jnp.float32),
        grid_spec=pltpu.PrefetchScalarGridSpec(
            num_scalar_prefetch=0,
            grid=grid,
            in_specs=[
                pl.BlockSpec((tm4, PACK), lambda i: (i, 0)),          # token tile
                pl.BlockSpec((KDIM, NDIM), lambda i: (0, 0)),         # LUT hi (resident)
                pl.BlockSpec((KDIM, NDIM), lambda i: (0, 0)),         # LUT lo (resident)
            ],
            out_specs=pl.BlockSpec((tm4, NDIM), lambda i: (i, 0)),
        ),
        compiler_params=pltpu.CompilerParams(
            dimension_semantics=("parallel",),
            vmem_limit_bytes=32 * 1024 * 1024,
        ),
        cost_estimate=pl.CostEstimate(flops=flops, transcendentals=0,
                                      bytes_accessed=bytes_accessed),
    )(tok4, lut_hi, lut_lo)


class PallasEncodeModel:
    """JAX/Pallas mirror of Encode_model for sr_choose in ('f_model', 'l_model').

    The fused encoder LUT (tanh(emb @ w + b), block-diagonalised and split into
    bf16 hi/lo halves) is precomputed once at construction and reused across calls.
    """

    def __init__(self, emb, w, b, pad_token_id=PAD_TOKEN_ID):
        self.pad_token_id = int(pad_token_id)
        lut = jnp.tanh(
            jnp.dot(emb, w, precision=jax.lax.Precision.HIGHEST) + b)           # [V, H]
        lut_bd = jnp.kron(jnp.eye(PACK, dtype=lut.dtype), lut)                  # [256, 128]
        lut_hi = lut_bd.astype(jnp.bfloat16)
        lut_lo = (lut_bd - lut_hi.astype(jnp.float32)).astype(jnp.bfloat16)
        self.lut_hi = jax.block_until_ready(lut_hi)
        self.lut_lo = jax.block_until_ready(lut_lo)

    def forward(self, batch):
        """batch: list of documents; each document is a list of 1-D NumPy int arrays
        of token ids (host-side, like CPU LongTensors in the original module).

        Returns (batch_size, embedded_big_tensor [N, max_len, H], sentences_per_doc).
        """
        batch_size = len(batch)
        sentences_per_doc = [len(doc) for doc in batch]
        all_sentences = [np.asarray(s, dtype=np.int32) for doc in batch for s in doc]

        lengths = [int(s.shape[0]) for s in all_sentences]
        max_length = max(lengths)
        N = len(all_sentences)

        # pad_l_model: right-pad each sentence with pad_token_id, cat along dim 0 —
        # done as one host fill; single H2D transfer below.
        big_np = np.full((N, max_length), self.pad_token_id, dtype=np.int32)
        for i, s in enumerate(all_sentences):
            big_np[i, :lengths[i]] = s

        # Flatten and pack PACK tokens per kernel row; bucket tile size and grid-step
        # count so distinct batch sizes reuse compiled kernels.
        T = N * max_length
        T4 = -(-T // PACK)
        tm4 = _choose_tm4(T4)
        steps = pl.next_power_of_2(pl.cdiv(T4, tm4))
        T4_pad = tm4 * steps
        tok_flat = np.full((T4_pad * PACK,), self.pad_token_id, dtype=np.int32)
        tok_flat[:T] = big_np.reshape(-1)
        tok4 = jnp.asarray(tok_flat.reshape(T4_pad, PACK))            # single H2D transfer

        out = _pallas_encoder(tok4, self.lut_hi, self.lut_lo, tm4)    # [T4_pad, 128] f32

        # [T4_pad, 128] -> [T4_pad*4, 32] is a free row-major bitcast; slice off padding.
        embedded_big_tensor = (
            out.reshape(T4_pad * PACK, HIDDEN)[:T].reshape(N, max_length, HIDDEN))
        return batch_size, embedded_big_tensor, sentences_per_doc

    __call__ = forward


def _reference_encoder(big_tensor, emb, w, b):
    x = jnp.take(emb, big_tensor, axis=0)                             # [N, L, D]
    proj = jnp.einsum("nld,dh->nlh", x, w,
                      precision=jax.lax.Precision.HIGHEST)
    return jnp.tanh(proj + b[0])


if __name__ == "__main__":
    key = jax.random.PRNGKey(0)
    k_emb, k_w, k_b, k_tok = jax.random.split(key, 4)

    # Deterministic "encoder" parameters (synthetic — shapes implied by a token encoder).
    emb = jax.random.normal(k_emb, (VOCAB, EMB_DIM), dtype=jnp.float32) * 0.1
    w = jax.random.normal(k_w, (EMB_DIM, HIDDEN), dtype=jnp.float32) * 0.1
    b = jax.random.normal(k_b, (1, HIDDEN), dtype=jnp.float32) * 0.1

    # Small batch: 2 documents, variable-length sentences of token ids (ids >= 1; 0 is PAD).
    # Token ids are converted to NumPy once at construction so forward() never syncs
    # per-sentence with the device.
    sent_lengths = [[5, 7], [3, 8, 6]]
    batch = []
    tk = k_tok
    for doc_lens in sent_lengths:
        doc = []
        for ln in doc_lens:
            tk, sub = jax.random.split(tk)
            ids = jax.random.randint(sub, (ln,), 1, VOCAB, dtype=jnp.int32)
            doc.append(np.asarray(jax.device_get(ids), dtype=np.int32))
        batch.append(doc)

    model = PallasEncodeModel(emb, w, b, pad_token_id=PAD_TOKEN_ID)
    batch_size, embedded, sentences_per_doc = model(batch)
    embedded = jax.block_until_ready(embedded)

    # Sanity-check against a plain-JAX reference of the same synthetic encoder.
    max_len = max(len(s) for doc in batch for s in doc)
    big = jnp.stack(
        [jnp.asarray(np.pad(s, (0, max_len - len(s)), constant_values=PAD_TOKEN_ID))
         for doc in batch for s in doc], 0)
    ref = _reference_encoder(big, emb, w, b)
    assert embedded.shape == (big.shape[0], max_len, HIDDEN)
    assert batch_size == 2 and sentences_per_doc == [2, 3]
    np.testing.assert_allclose(np.asarray(embedded), np.asarray(ref), rtol=1e-5, atol=1e-5)

    print("KERNEL_OK")
</pallas_src>

<mosaic_0001>
module attributes {stable_mosaic.version = 11 : i64} {
  func.func @_encoder_lut_kernel(%arg0: i32, %arg1: memref<8x4xi32, #tpu.memory_space<vmem>>, %arg2: memref<256x128xbf16, #tpu.memory_space<vmem>>, %arg3: memref<256x128xbf16, #tpu.memory_space<vmem>>, %arg4: memref<8x128xf32, #tpu.memory_space<vmem>>) attributes {dimension_semantics = [#tpu.dimension_semantics<parallel>], iteration_bounds = array<i64: 2>, scalar_prefetch = 0 : i64, scratch_operands = 0 : i64, tpu.core_type = #tpu.core_type<tc>, window_params = [{transform_indices = @transform_0, window_bounds = array<i64: 8, 4>}, {pipeline_mode = #tpu.pipeline_mode<synchronous>, transform_indices = @transform_1, window_bounds = array<i64: 256, 128>}, {pipeline_mode = #tpu.pipeline_mode<synchronous>, transform_indices = @transform_2, window_bounds = array<i64: 256, 128>}, {transform_indices = @transform_3, window_bounds = array<i64: 8, 128>}]} {
    %c0 = arith.constant 0 : index
    %c0_0 = arith.constant 0 : index
    %0 = vector.load %arg1[%c0, %c0_0] : memref<8x4xi32, #tpu.memory_space<vmem>>, vector<8x4xi32>
    %c0_i32 = arith.constant 0 : i32
    %c63_i32 = arith.constant 63 : i32
    %1 = vector.broadcast %c0_i32 : i32 to vector<8x4xi32>
    %2 = arith.maxsi %1, %0 : vector<8x4xi32>
    %3 = vector.broadcast %c63_i32 : i32 to vector<8x4xi32>
    %4 = arith.minsi %3, %2 : vector<8x4xi32>
    %5 = tpu.iota {dimensions = array<i32: 1>} : vector<8x256xi32>
    %6 = vector.extract_strided_slice %4 {offsets = [0, 3], sizes = [8, 1], strides = [1, 1]} : vector<8x4xi32> to vector<8x1xi32>
    %c192_i32 = arith.constant 192 : i32
    %7 = vector.broadcast %c192_i32 : i32 to vector<8x256xi32>
    %8 = arith.cmpi slt, %5, %7 : vector<8x256xi32>
    %9 = vector.extract_strided_slice %4 {offsets = [0, 2], sizes = [8, 1], strides = [1, 1]} : vector<8x4xi32> to vector<8x1xi32>
    %10 = vector.shape_cast %9 : vector<8x1xi32> to vector<8x1xi32>
    %11 = vector.broadcast %10 : vector<8x1xi32> to vector<8x256xi32>
    %12 = vector.shape_cast %6 : vector<8x1xi32> to vector<8x1xi32>
    %13 = vector.broadcast %12 : vector<8x1xi32> to vector<8x256xi32>
    %14 = arith.select %8, %11, %13 : vector<8x256xi1>, vector<8x256xi32>
    %c128_i32 = arith.constant 128 : i32
    %15 = vector.broadcast %c128_i32 : i32 to vector<8x256xi32>
    %16 = arith.cmpi slt, %5, %15 : vector<8x256xi32>
    %17 = vector.extract_strided_slice %4 {offsets = [0, 1], sizes = [8, 1], strides = [1, 1]} : vector<8x4xi32> to vector<8x1xi32>
    %18 = vector.shape_cast %17 : vector<8x1xi32> to vector<8x1xi32>
    %19 = vector.broadcast %18 : vector<8x1xi32> to vector<8x256xi32>
    %20 = arith.select %16, %19, %14 : vector<8x256xi1>, vector<8x256xi32>
    %c64_i32 = arith.constant 64 : i32
    %21 = vector.broadcast %c64_i32 : i32 to vector<8x256xi32>
    %22 = arith.cmpi slt, %5, %21 : vector<8x256xi32>
    %23 = vector.extract_strided_slice %4 {offsets = [0, 0], sizes = [8, 1], strides = [1, 1]} : vector<8x4xi32> to vector<8x1xi32>
    %24 = vector.shape_cast %23 : vector<8x1xi32> to vector<8x1xi32>
    %25 = vector.broadcast %24 : vector<8x1xi32> to vector<8x256xi32>
    %26 = arith.select %22, %25, %20 : vector<8x256xi1>, vector<8x256xi32>
    %c63_i32_1 = arith.constant 63 : i32
    %27 = vector.broadcast %c63_i32_1 : i32 to vector<8x256xi32>
    %28 = arith.andi %5, %27 : vector<8x256xi32>
    %29 = arith.cmpi eq, %28, %26 : vector<8x256xi32>
    %30 = arith.extui %29 : vector<8x256xi1> to vector<8x256xi32>
    %31 = arith.sitofp %30 : vector<8x256xi32> to vector<8x256xf32>
    %32 = arith.truncf %31 : vector<8x256xf32> to vector<8x256xbf16>
    %c0_2 = arith.constant 0 : index
    %c0_3 = arith.constant 0 : index
    %33 = vector.load %arg2[%c0_2, %c0_3] : memref<256x128xbf16, #tpu.memory_space<vmem>>, vector<256x128xbf16>
    %cst = arith.constant dense<0.000000e+00> : vector<8x128xf32>
    %34 = tpu.matmul %32, %33, %cst {dimension_numbers = #tpu.dot_dimension_numbers<[1], [0], [0], [1], [0, 0, 1, 1], [], []>} : vector<8x256xbf16>, vector<256x128xbf16>, vector<8x128xf32> -> vector<8x128xf32>
    %c0_4 = arith.constant 0 : index
    %c0_5 = arith.constant 0 : index
    %35 = vector.load %arg3[%c0_4, %c0_5] : memref<256x128xbf16, #tpu.memory_space<vmem>>, vector<256x128xbf16>
    %cst_6 = arith.constant dense<0.000000e+00> : vector<8x128xf32>
    %36 = tpu.matmul %32, %35, %cst_6 {dimension_numbers = #tpu.dot_dimension_numbers<[1], [0], [0], [1], [0, 0, 1, 1], [], []>} : vector<8x256xbf16>, vector<256x128xbf16>, vector<8x128xf32> -> vector<8x128xf32>
    %37 = arith.addf %34, %36 : vector<8x128xf32>
    %c0_7 = arith.constant 0 : index
    %c0_8 = arith.constant 0 : index
    %38 = vector.load %arg4[%c0_7, %c0_8] : memref<8x128xf32, #tpu.memory_space<vmem>>, vector<8x128xf32>
    tpu.vector_store %arg4[%c0_7, %c0_8], %37 {strides = array<i32>} : memref<8x128xf32, #tpu.memory_space<vmem>>, vector<8x128xf32>,
    return
  }
  func.func @transform_0(%arg0: i32) -> (i32, i32) {
    %c0_i32 = arith.constant 0 : i32
    %c0_i32_0 = arith.constant 0 : i32
    return %arg0, %c0_i32 : i32, i32
  }
  func.func @transform_1(%arg0: i32) -> (i32, i32) {
    %c0_i32 = arith.constant 0 : i32
    %c0_i32_0 = arith.constant 0 : i32
    %c0_i32_1 = arith.constant 0 : i32
    return %c0_i32, %c0_i32_0 : i32, i32
  }
  func.func @transform_2(%arg0: i32) -> (i32, i32) {
    %c0_i32 = arith.constant 0 : i32
    %c0_i32_0 = arith.constant 0 : i32
    %c0_i32_1 = arith.constant 0 : i32
    return %c0_i32, %c0_i32_0 : i32, i32
  }
  func.func @transform_3(%arg0: i32) -> (i32, i32) {
    %c0_i32 = arith.constant 0 : i32
    %c0_i32_0 = arith.constant 0 : i32
    return %arg0, %c0_i32 : i32, i32
  }
}

</mosaic_0001>

<bundles_post_ra>
// kernel: tpu_custom_call.1
= control target key start
LH: loop header
LB: loop body
LE: loop exit
PB: predicated region body
PF: predicated region fallthrough
CT: control target
= control target key end

     0   :  { %8 = vsyncpa [#allocation3], 0  ;;  %s1175_s0 = inlined_call_operand.vmem [shape: s32[16,4], index: 0, kind: input, shape index: {}]   ;;  %s1176_s1 = inlined_call_operand.hbm [shape: bf16[256,128], index: 1, kind: input, shape index: {}]   ;;  %s1177_s2 = inlined_call_operand.hbm [shape: bf16[256,128], index: 2, kind: input, shape index: {}]   ;;  %s1178_s3 = inlined_call_operand.hbm [shape: f32[16,128], index: 3, kind: output, shape index: {}]  }
   0x1   :  { %9 = vsyncpa [#allocation6], 0 }
   0x2   :  { %10 = vsyncpa [#allocation4], 0 }
   0x3   :  { %12 = vsyncpa [#allocation4 + $0x1], 0  ;;  %s1065_s12 = smov 0   ;;  %s1067_s13 = smov 0  }
   0x4   :  { %s1069_s14 = smov 0   ;;  %s1071_s15 = smov 0  }
   0x5 LB: > { %s1086_s16 = sadd.s32 4294967295, %s1034_s15   ;;  %s648_s17 = sadd.s32 4294967294, %s1034_s15   ;;  %s1034_s15 = sphi %s1071_s15, %s1185_s15   ;;  %s1030_s14 = sphi %s1069_s14, %s1184_s14   ;;  %s1026_s13 = sphi %s1067_s13, %s1183_s13   ;;  %s1022_s12 = sphi %s1065_s12, %s1182_s12  }
   0x6   : > { %s1090_s18 = sadd.s32 1, %s1034_s15   ;;  %s93_s19 = sadd.s32 1, %s1030_s14 }
   0x7   : > { %s90_s20 = ssub.s32 %s1034_s15, %s1090_s18  ;;  %p103_p0 = scmp.ne.s32.totalorder %s1030_s14, %s1026_s13 }
   0x8   : > { %p91_p1 = scmp.eq.s32.totalorder %s90_s20, 0  ;;  %p104_p2 = scmp.eq.s32.totalorder %s1086_s16, 1 }
   0x9   : > { %p109_p3 = scmp.ne.s32.totalorder %s1026_s13, %s1022_s12  ;;  %p110_p4 = scmp.eq.s32.totalorder %s648_s17, 1 }
   0xa   : > { %s1101_s21 = scalar_select %p91_p1, %s1030_s14, %s93_s19  }
   0xb   : > { %p1103_p5 = por %p104_p2, %p103_p0  ;;  %p1107_p6 = por %p110_p4, %p109_p3 }
   0xc   : > { %p649_p7 = scmp.ge.s32.totalorder %s1034_s15, 1  ;;  %p117_p8 = scmp.lt.s32.totalorder %s1034_s15, 3 }
   0xd   : > { %p853_p9 = scmp.eq.s32.totalorder %s1086_s16, 0  ;;  %s128_s27 = sshll.u32 %s1176_s1, 4  ;;  %s129_s27 = int_to_ptr.hbm [resolvable:$true] %s128_s27 }
   0xe   : > { %p1114_p10 = pnand %p649_p7, %p117_p8  ;;  %s1036_s28 = smov [#allocation2]  }
   0xf   : > { %s130_s29 = sshll.u32 %s1036_s28, 4  ;;  %s142_s5 = sshll.u32 %s1177_s2, 4  ;;  %s131_s29 = int_to_ptr.vmem [resolvable:$true] %s130_s29  ;;  %s143_s5 = int_to_ptr.hbm [resolvable:$true] %s142_s5 }
  0x10   : > { %p842_p11 = pneg %p1114_p10  ;;  %s1037_s6 = smov 64  }
  0x11   : > { %s1038_s7 = smov 4   ;;  %s1039_s8 = smov [#allocation5]  }
  0x12   : > { %p843_p12 = pnand %p853_p9, %p842_p11  ;;  %s144_s9 = sshll.u32 %s1039_s8, 4  ;;  %s145_s9 = int_to_ptr.vmem [resolvable:$true] %s144_s9 }
  0x13   : > { %167 = sbr.rel (%p1114_p10) target bundleno = 306 (0x132), region = 32 }
  0x14   : > { %845 = dma.hbm_to_vmem [thread:$0]  (!%p843_p12), %s129_s27, 2048, %s131_s29, [#allocation3], %s1037_s6, %s1037_s6, %s1038_s7  }
  0x15   : > { %848 = dma.hbm_to_vmem [thread:$0]  (!%p843_p12), %s143_s5, 2048, %s145_s9, [#allocation6], %s1037_s6, %s1037_s6, %s1038_s7  }
  0x18   : > { %1009 = dma.done.wait (%p853_p9), [#allocation3], 2048  }
  0x19   : > { %1011 = vsyncadd (%p853_p9), [#allocation3], 4294965248 }
  0x1a   : > { %1013 = dma.done.wait (%p853_p9), [#allocation6], 2048  }
  0x1b   : > { %1015 = vsyncadd (%p853_p9), [#allocation6], 4294965248  ;;  %p196_p13 = scmp.lt.s32.totalorder %s1086_s16, 1  ;;  %v1040_v0 = vmov 1   ;;  %v1041_v1 = vmov 2   ;;  %v823_v3 = vld [vmem:[#allocation5 + $0x38] sm:$0xff]  ;;  %v205_v39 = vlaneseq }
  0x1c   : > { %901 = vset.pattern.permute.xlu1 %v1040_v0  ;;  %899 = vset.pattern.permute.xlu0 %v1041_v1  ;;  %v831_v4 = vld [vmem:[#allocation5 + $0x78] sm:$0xff]  ;;  %v822_v8 = vld [vmem:[#allocation5 + $0x30] sm:$0xff]  ;;  %v821_v13 = vld [vmem:[#allocation5 + $0x28] sm:$0xff]  ;;  %v1042_v21 = vmov 0   ;;  %v1043_v22 = vmov 3   ;;  %s193_s24 = sand.u32 1, %s1026_s13  }
  0x1d   : > { %s197_s10 = scalar_select %p196_p13, %s1086_s16, 1  ;;  %v807_v5 = vld [vmem:[#allocation2 + $0x38] sm:$0xff]  ;;  %402 = vmatpush.bf16.msra.mxu0 %v823_v3  ;;  %415 = vmatpush.bf16.msra.mxu1 %v831_v4  ;;  %v830_v9 = vld [vmem:[#allocation5 + $0x70] sm:$0xff]  ;;  %v829_v14 = vld [vmem:[#allocation5 + $0x68] sm:$0xff]  ;;  %v206_v40 = vand.u32 127, %v205_v39 }
  0x1e   : > { %v815_v6 = vld [vmem:[#allocation2 + $0x78] sm:$0xff]  ;;  %524 = vmatpush.bf16.msra.mxu2 %v807_v5  ;;  %v806_v10 = vld [vmem:[#allocation2 + $0x30] sm:$0xff]  ;;  %v805_v15 = vld [vmem:[#allocation2 + $0x28] sm:$0xff]  ;;  %v1044_v50 = vmov 1.0|1.0   ;;  %s656_s25 = sshll.u32 %s193_s24, 3 }
  0x1f   : > { %s657_s11 = sshll.u32 %s197_s10, 3  ;;  %537 = vmatpush.bf16.msra.mxu3 %v815_v6  ;;  %v814_v11 = vld [vmem:[#allocation2 + $0x70] sm:$0xff]  ;;  %v813_v16 = vld [vmem:[#allocation2 + $0x68] sm:$0xff]  ;;  %v820_v17 = vld [vmem:[#allocation5 + $0x20] sm:$0xff]  ;;  %v207_v43 = vadd.s32 128, %v206_v40  ;;  %vm225_vm2 = vcmp.lt.s32.totalorder %v206_v40, 64 }
  0x20   : > { %s199_s20 = scalar_lea.vmem %s1175_s0, %s657_s11  ;;  %v828_v18 = vld [vmem:[#allocation5 + $0x60] sm:$0xff]  ;;  %v819_v23 = vld [vmem:[#allocation5 + $0x18] sm:$0xff]  ;;  %v818_v27 = vld [vmem:[#allocation5 + $0x10] sm:$0xff]  ;;  %v232_v44 = vand.u32 63, %v206_v40  ;;  %s797_s26 = sshll.u32 %s1086_s16, 3 }
  0x21   : > { %v200_v2 = vld [vmem:[%s199_s20] sm:$0xff]  ;;  %403 = vmatpush.bf16.msra.mxu0 %v822_v8  ;;  %416 = vmatpush.bf16.msra.mxu1 %v830_v9  ;;  %v827_v24 = vld [vmem:[#allocation5 + $0x58] sm:$0xff]  ;;  %v826_v28 = vld [vmem:[#allocation5 + $0x50] sm:$0xff]  ;;  %vm209_vm3 = vcmp.lt.s32.totalorder %v207_v43, 192  ;;  %v233_v45 = vand.u32 63, %v207_v43  ;;  %s562_s29 = scalar_lea.hbm %s1178_s3, %s797_s26  ;;  %s195_s30 = scalar_lea.vmem [#allocation7], %s656_s25 }
  0x22   : > { %vm201_vm0 = vcmp.gt.s32.totalorder %v200_v2, 0  ;;  %525 = vmatpush.bf16.msra.mxu2 %v806_v10  ;;  %v804_v19 = vld [vmem:[#allocation2 + $0x20] sm:$0xff]  ;;  %v803_v25 = vld [vmem:[#allocation2 + $0x18] sm:$0xff]  ;;  %v802_v29 = vld [vmem:[#allocation2 + $0x10] sm:$0xff]  ;;  %s564_s4 = sshll.u32 %s195_s30, 4  ;;  %s566_s5 = sshll.u32 %s562_s29, 4  ;;  %s565_s4 = int_to_ptr.vmem [resolvable:$true] %s564_s4  ;;  %s567_s5 = int_to_ptr.hbm [resolvable:$true] %s566_s5 }
  0x23   : > { %v202_v7 = vsel %vm201_vm0, %v200_v2, 0  ;;  %538 = vmatpush.bf16.msra.mxu3 %v814_v11  ;;  %v812_v20 = vld [vmem:[#allocation2 + $0x60] sm:$0xff]  ;;  %v811_v26 = vld [vmem:[#allocation2 + $0x58] sm:$0xff]  ;;  %v810_v30 = vld [vmem:[#allocation2 + $0x50] sm:$0xff]  ;;  %s552_s16 = scalar_lea.sflag [#allocation4], %s193_s24  ;;  %s978_s6 = sshra.s32 %s567_s5, 4  ;;  %s979_s6 = int_to_ptr.hbm [resolvable:$true] %s978_s6 }
  0x24   : > { %vm203_vm1 = vcmp.lt.s32.totalorder %v202_v7, 63  ;;  %v817_v31 = vld [vmem:[#allocation5 + $0x8] sm:$0xff]  ;;  %v816_v35 = vld [vmem:[#allocation5] sm:$0xff]  ;;  %s980_s7 = scalar_lea.hbm %s979_s6, 8  ;;  %s984_s10 = scalar_lea.hbm %s1178_s3, 16 }
  0x25   : > { %v204_v12 = vsel %vm203_vm1, %v202_v7, 63  ;;  %404 = vmatpush.bf16.msra.mxu0 %v821_v13  ;;  %417 = vmatpush.bf16.msra.mxu1 %v829_v14  ;;  %v825_v32 = vld [vmem:[#allocation5 + $0x48] sm:$0xff]  ;;  %v824_v36 = vld [vmem:[#allocation5 + $0x40] sm:$0xff]  ;;  %p981_p0 = scmp.ne.s32.totalorder %s979_s6, %s980_s7  ;;  %p985_p3 = scmp.lt.s32.totalorder %s979_s6, %s1178_s3 }
  0x26   : > { %221 = vperm.xlu1 %901, %v204_v12   ;;  %211 = vperm.xlu0 %899, %v204_v12   ;;  %v801_v33 = vld [vmem:[#allocation2 + $0x8] sm:$0xff]  ;;  %v800_v37 = vld [vmem:[#allocation2] sm:$0xff]  ;;  %p986_p4 = scmp.lt.s32.totalorder %s984_s10, %s980_s7 }
  0x27   : > { %526 = vmatpush.bf16.msra.mxu2 %v805_v15  ;;  %539 = vmatpush.bf16.msra.mxu3 %v813_v16  ;;  %v809_v34 = vld [vmem:[#allocation2 + $0x48] sm:$0xff]  ;;  %v808_v38 = vld [vmem:[#allocation2 + $0x40] sm:$0xff]  ;;  %p982_p1 = pnand %p981_p0, %p1103_p5 }
  0x28   : > { %p987_p7 = por %p986_p4, %p985_p3 }
  0x29   : > { %405 = vmatpush.bf16.msra.mxu0 %v820_v17  ;;  %418 = vmatpush.bf16.msra.mxu1 %v828_v18  ;;  %p983_p2 = pneg %p982_p1 }
  0x2b   : > { %527 = vmatpush.bf16.msra.mxu2 %v804_v19  ;;  %540 = vmatpush.bf16.msra.mxu3 %v812_v20  ;;  %p988_p8 = pnand %p987_p7, %p983_p2 }
  0x2d   : > { %406 = vmatpush.bf16.msra.mxu0 %v819_v23  ;;  %419 = vmatpush.bf16.msra.mxu1 %v827_v24 }
  0x2e   : > { %902 = vset.pattern.permute.xlu1 %v1042_v21  ;;  %900 = vset.pattern.permute.xlu0 %v1043_v22 }
  0x2f   : > { %228 = vperm.xlu1 %902, %v204_v12   ;;  %214 = vperm.xlu0 %900, %v204_v12  }
  0x30   : > { %528 = vmatpush.bf16.msra.mxu2 %v803_v25  ;;  %541 = vmatpush.bf16.msra.mxu3 %v811_v26 }
  0x31   : > { %407 = vmatpush.bf16.msra.mxu0 %v818_v27  ;;  %420 = vmatpush.bf16.msra.mxu1 %v826_v28 }
  0x34   : > { %529 = vmatpush.bf16.msra.mxu2 %v802_v29  ;;  %542 = vmatpush.bf16.msra.mxu3 %v810_v30 }
  0x35   : > { %408 = vmatpush.bf16.msra.mxu0 %v817_v31  ;;  %421 = vmatpush.bf16.msra.mxu1 %v825_v32 }
  0x37   : > { %903 = vset.pattern.permute.xlu0 %v1042_v21 }
  0x38   : > { %530 = vmatpush.bf16.msra.mxu2 %v801_v33  ;;  %543 = vmatpush.bf16.msra.mxu3 %v809_v34 }
  0x39   : > { %409 = vmatpush.bf16.msra.mxu0 %v816_v35  ;;  %422 = vmatpush.bf16.msra.mxu1 %v824_v36 }
  0x3c   : > { %531 = vmatpush.bf16.msra.mxu2 %v800_v37  ;;  %544 = vmatpush.bf16.msra.mxu3 %v808_v38 }
  0x98   : > { %v222_v41 = vpop.permute.xlu1 %221  ;;  %v212_v42 = vpop.permute.xlu0 %211 }
  0xa1   : > { %v229_v46 = vpop.permute.xlu1 %228  ;;  %v215_v47 = vpop.permute.xlu0 %214 }
  0xa2   : > { %v230_v48 = vsel %vm225_vm2, %v229_v46, %v222_v41  ;;  %v217_v49 = vsel %vm209_vm3, %v212_v42, %v215_v47 }
  0xa3   : > { %vm234_vm4 = vcmp.eq.s32.totalorder %v232_v44, %v230_v48  ;;  %vm235_vm5 = vcmp.eq.s32.totalorder %v233_v45, %v217_v49 }
  0xa4   : > { %vm724_vm6 = vmpackc.low %vm234_vm4, %vm234_vm4 }
  0xa5   : > { %725 = vmatmul.msk.bf16.vlgmr.msra.gmra.mxu0 %vm724_vm6, %v1044_v50  ;;  %vm726_vm7 = vmpackc.low %vm235_vm5, %vm235_vm5  ;;  %793 = vmatmul.msk.bf16.vlgmr.msra.gmra.mxu2 %vm724_vm6, %v1044_v50 }
  0xa6   : > { %727 = vmatmul.msk.bf16.vlgmr.msra.gmra.mxu1 %vm726_vm7, %v1044_v50  ;;  %795 = vmatmul.msk.bf16.vlgmr.msra.gmra.mxu3 %vm726_vm7, %v1044_v50 }
 0x122   : > { %v411_v51 = vpop.f32.mrf.mxu0 }
 0x123   : > { %v424_v52 = vpop.f32.mrf.mxu1 }
 0x124   : > { %v425_v53 = vadd.f32 %v424_v52, %v411_v51 }
 0x128   : > { %v533_v54 = vpop.f32.mrf.mxu2 }
 0x129   : > { %v534_v55 = vadd.f32 %v533_v54, %v425_v53  ;;  %v546_v56 = vpop.f32.mrf.mxu3 }
 0x12a   : > { %v413_v57 = vpop.f32.mrf.mxu0 }
 0x12b   : > { %v547_v58 = vadd.f32 %v546_v56, %v534_v55  ;;  %v426_v59 = vpop.f32.mrf.mxu1 }
 0x12d   : > { %550 = vst [vmem:[%s195_s30] sm:$0xff] %v547_v58 }
 0x12e   : > { %991 = shalt.err (!%p988_p8)
}
 0x12f   : > { %840 = dma.vmem_to_hbm [thread:$0]  (%p1103_p5), %s565_s4, 128, %s567_s5, %s552_s16  }
 0x130   : > { %v535_v60 = vpop.f32.mrf.mxu2 }
 0x131   : > { %v548_v61 = vpop.f32.mrf.mxu3 }
 0x132 PF: > { %p857_p9 = scmp.ge.s32.totalorder %s1034_s15, 2  ;;  %s578_s19 = sand.u32 1, %s1022_s12  }
 0x133   : > { %s579_s20 = scalar_lea.sflag [#allocation4], %s578_s19 }
 0x134   : > { %p850_p10 = pnand %p857_p9, %p1107_p6 }
 0x136   : > { %p851_p11 = pneg %p850_p10 }
 0x138   : > { %1017 = dma.done.wait (%p851_p11), %s579_s20, 128  }
 0x139   : > { %1019 = vsyncadd (%p851_p11), %s579_s20, 4294967168  ;;  %p15_p5 = scmp.ge.s32.totalorder %s1090_s18, 4   ;;  %s1182_s12 = smov %s1026_s13 }
 0x13a   : > { %s1183_s13 = smov %s1030_s14  ;;  %s1184_s14 = smov %s1101_s21 }
 0x13b   : > { %s1185_s15 = smov %s1090_s18  ;;  %17 = sbr.rel (!%p15_p5) target bundleno = 5 (0x5), region = 76 }
 0x140   :  { %585 = vsyncpa [#allocation3], 1 }
 0x141   :  { %587 = vsyncpa [#allocation3 + $0x1], 1 }
 0x142   :  { %588 = vsyncpa [#allocation6], 1 }
 0x143   :  { %589 = vsyncpa [#allocation4], 1 }
 0x144   :  { %591 = vsyncpa [#allocation4 + $0x1], 1 }

</bundles_post_ra>
